<compile_context>
chip_gen: v6e
topology: v6e:2x2x1
jax: 0.10.0
libtpu: 0.0.40
codegen_flags: <defaults>
</compile_context>

<pallas_src>
import functools

import jax
import jax.numpy as jnp
from jax.experimental import pallas as pl
from jax.experimental.pallas import tpu as pltpu


def _kl_div_row_kernel(*refs, has_mask):
    """Per-tile body: writes per-row symmetric-KL sums to out_ref [tile_n, 1]."""
    if has_mask:
        x_ref, t_ref, m_ref, out_ref = refs
    else:
        x_ref, t_ref, out_ref = refs
        m_ref = None

    # Upcast once; inputs may travel as bf16 to halve HBM traffic.
    x = x_ref[...].astype(jnp.float32)   # [tile_n, C] "input"  logits
    t = t_ref[...].astype(jnp.float32)   # [tile_n, C] "target" logits

    # Shifted logits + exp, shared between softmax and log-softmax.
    x_sh = x - jnp.max(x, axis=-1, keepdims=True)
    t_sh = t - jnp.max(t, axis=-1, keepdims=True)
    ex = jnp.exp(x_sh)
    et = jnp.exp(t_sh)
    sx = jnp.sum(ex, axis=-1, keepdims=True)     # [tile_n, 1]
    st = jnp.sum(et, axis=-1, keepdims=True)     # [tile_n, 1]

    # Per-row normalizers on the EUP slot (approx reciprocal + 1 Newton step
    # for full f32 accuracy); these are [tile_n, 1] so essentially free.
    rsx = pl.reciprocal(sx, approx=True)
    rsx = rsx * (2.0 - sx * rsx)
    rst = pl.reciprocal(st, approx=True)
    rst = rst * (2.0 - st * rst)

    # 0.5 * [pt*(log_pt - log_px) + px*(log_px - log_pt)]
    #   == 0.5 * (pt - px) * (log_pt - log_px)
    # with  log_pt - log_px = (t_sh - x_sh) - (log st - log sx)   (row bcast)
    # and   pt - px         = et*rst - ex*rsx
    dlog = (t_sh - x_sh) - (jnp.log(st) - jnp.log(sx))
    dp = et * rst - ex * rsx
    contrib = dp * dlog                           # [tile_n, C]

    if has_mask:
        contrib = jnp.where(m_ref[...] != 0, 0.0, contrib)

    # Fold the 0.5 into the reduced [tile_n, 1] result, not the full tile.
    out_ref[...] = 0.5 * jnp.sum(contrib, axis=-1, keepdims=True)


def _vmem_limit_bytes():
    """Scoped VMEM request, derived from the hardware's physical capacity."""
    cap = 64 << 20                       # conservative fallback (v7x per-TC)
    try:
        info = pltpu.get_tpu_info()
        cap = int(getattr(info, "vmem_capacity_bytes", cap))
    except Exception:
        pass
    # Request at most half the physical capacity, never more than 48 MiB.
    return int(min(cap // 2, 48 << 20))


def _choose_tile_n(N, C, has_mask, in_itemsize, vmem_limit_bytes):
    """Largest row tile whose pipeline buffers + in-kernel f32 temporaries fit
    comfortably inside the scoped VMEM limit, with >=2 grid steps when there
    is enough work to keep both v7x TensorCores busy."""
    align = 32 if has_mask else 8        # int8 mask wants (32, 128) tiling
    budget = max(vmem_limit_bytes // 2, 1 << 20)
    # Per-row bytes:
    #   inputs : 2 arrays x 2 pipeline buffers x native itemsize
    #   temps  : ~8 live [tile_n, C] f32 intermediates in the kernel body
    #   mask   : optional int8 x 2 pipeline buffers
    bytes_per_row = C * (4 * in_itemsize + 8 * 4 + (2 if has_mask else 0)) + 64
    t = max(budget // max(bytes_per_row, 1), align)
    t = (t // align) * align
    # Megacore (v7x): keep at least 2 grid steps when there is work to split.
    if N >= 2 * align:
        half = -(-N // 2)
        t = min(t, ((half + align - 1) // align) * align)
    if t >= N:
        return int(N)                    # single full-extent block (always legal)
    return int(t)


@functools.partial(jax.jit, static_argnames=("reduction", "tile_n"))
def kl_divergence_loss(input, target, pad_mask=None, reduction="sum",
                       tile_n=None):
    """Symmetric KL divergence loss (matches the PyTorch module).

    input:  [N, C] logits (f32 or bf16)
    target: [N, C] logits
    pad_mask: optional [N, C] boolean mask; True entries are zeroed out.
    reduction: 'sum' or 'mean' (mean over all N*C elements, as in PyTorch).
    """
    N, C = input.shape
    has_mask = pad_mask is not None
    vmem_limit = _vmem_limit_bytes()

    if tile_n is None:
        tile_n = _choose_tile_n(N, C, has_mask,
                                jnp.dtype(input.dtype).itemsize, vmem_limit)
    tile_n = int(min(int(tile_n), max(N, 1)))

    grid_n = pl.cdiv(N, tile_n)

    kernel = functools.partial(_kl_div_row_kernel, has_mask=has_mask)

    row_spec = pl.BlockSpec((tile_n, C), lambda i: (i, 0))
    in_specs = [row_spec, row_spec]
    args = [input, target]
    if has_mask:
        in_specs.append(row_spec)
        args.append(pad_mask.astype(jnp.int8))   # 4x fewer HBM bytes than f32

    row_sums = pl.pallas_call(
        kernel,
        out_shape=jax.ShapeDtypeStruct((N, 1), jnp.float32),
        grid_spec=pltpu.PrefetchScalarGridSpec(
            num_scalar_prefetch=0,
            grid=(grid_n,),
            in_specs=in_specs,
            out_specs=pl.BlockSpec((tile_n, 1), lambda i: (i, 0)),
        ),
        compiler_params=pltpu.CompilerParams(
            dimension_semantics=("parallel",),   # independent tiles -> megacore
            vmem_limit_bytes=vmem_limit,
        ),
    )(*args)

    total = jnp.sum(row_sums)
    if reduction == "mean":
        total = total / (N * C)
    return total


def _reference(input, target, pad_mask=None, reduction="sum"):
    """Pure-JAX reference mirroring the PyTorch module."""
    input = input.astype(jnp.float32)
    target = target.astype(jnp.float32)
    log_px = jax.nn.log_softmax(input, axis=-1)
    log_pt = jax.nn.log_softmax(target, axis=-1)
    px = jnp.exp(log_px)
    pt = jnp.exp(log_pt)
    input_target = pt * (log_pt - log_px)
    target_input = px * (log_px - log_pt)
    if pad_mask is not None:
        input_target = jnp.where(pad_mask, 0.0, input_target)
        target_input = jnp.where(pad_mask, 0.0, target_input)
    loss = 0.5 * (input_target + target_input)
    return loss.mean() if reduction == "mean" else loss.sum()


if __name__ == "__main__":
    key = jax.random.PRNGKey(0)
    k1, k2, k3, k4, k5, k6, k7, k8 = jax.random.split(key, 8)

    # 1) Small case matching the module spec: [N, C] logits.
    N, C = 8, 32
    x = jax.random.normal(k1, (N, C), dtype=jnp.float32)
    t = jax.random.normal(k2, (N, C), dtype=jnp.float32)
    pad_mask = jax.random.bernoulli(k3, p=0.2, shape=(N, C))

    out_sum = kl_divergence_loss(x, t, reduction="sum")
    jax.block_until_ready(out_sum)
    ref_sum = _reference(x, t, reduction="sum")
    assert jnp.allclose(out_sum, ref_sum, rtol=1e-5, atol=1e-5), (out_sum, ref_sum)

    out_mean = kl_divergence_loss(x, t, pad_mask=pad_mask, reduction="mean")
    jax.block_until_ready(out_mean)
    ref_mean = _reference(x, t, pad_mask=pad_mask, reduction="mean")
    assert jnp.allclose(out_mean, ref_mean, rtol=1e-5, atol=1e-5), (out_mean, ref_mean)

    # 2) Ragged / multi-tile / masked case (exercises partial-block writeback).
    N2, C2 = 200, 160
    x2 = jax.random.normal(k4, (N2, C2), dtype=jnp.float32)
    t2 = jax.random.normal(k5, (N2, C2), dtype=jnp.float32)
    m2 = jax.random.bernoulli(k6, p=0.3, shape=(N2, C2))

    out2 = kl_divergence_loss(x2, t2, pad_mask=m2, reduction="sum", tile_n=64)
    jax.block_until_ready(out2)
    ref2 = _reference(x2, t2, pad_mask=m2, reduction="sum")
    assert jnp.allclose(out2, ref2, rtol=1e-4, atol=1e-5), (out2, ref2)

    # 3) bf16 logits end-to-end (narrow DMA, f32 math in-kernel), auto tiling.
    N3, C3 = 300, 128
    x3 = jax.random.normal(k7, (N3, C3), dtype=jnp.float32).astype(jnp.bfloat16)
    t3 = jax.random.normal(k8, (N3, C3), dtype=jnp.float32).astype(jnp.bfloat16)

    out3 = kl_divergence_loss(x3, t3, reduction="mean")
    jax.block_until_ready(out3)
    ref3 = _reference(x3, t3, reduction="mean")
    assert jnp.allclose(out3, ref3, rtol=1e-4, atol=1e-6), (out3, ref3)

    print("KERNEL_OK")
</pallas_src>

<mosaic_0001>
module attributes {stable_mosaic.version = 11 : i64} {
  func.func @_kl_div_row_kernel(%arg0: i32, %arg1: memref<8x32xf32, #tpu.memory_space<vmem>>, %arg2: memref<8x32xf32, #tpu.memory_space<vmem>>, %arg3: memref<8x1xf32, #tpu.memory_space<vmem>>) attributes {dimension_semantics = [#tpu.dimension_semantics<parallel>], iteration_bounds = array<i64: 1>, scalar_prefetch = 0 : i64, scratch_operands = 0 : i64, tpu.core_type = #tpu.core_type<tc>, window_params = [{transform_indices = @transform_0, window_bounds = array<i64: 8, 32>}, {transform_indices = @transform_1, window_bounds = array<i64: 8, 32>}, {transform_indices = @transform_2, window_bounds = array<i64: 8, 1>}]} {
    %c0 = arith.constant 0 : index
    %c0_0 = arith.constant 0 : index
    %0 = vector.load %arg1[%c0, %c0_0] : memref<8x32xf32, #tpu.memory_space<vmem>>, vector<8x32xf32>
    %c0_1 = arith.constant 0 : index
    %c0_2 = arith.constant 0 : index
    %1 = vector.load %arg2[%c0_1, %c0_2] : memref<8x32xf32, #tpu.memory_space<vmem>>, vector<8x32xf32>
    %cst = arith.constant dense<0xFF800000> : vector<8xf32>
    %2 = vector.multi_reduction <maximumf>, %0, %cst [1] : vector<8x32xf32> to vector<8xf32>
    %3 = vector.shape_cast %2 : vector<8xf32> to vector<8x1xf32>
    %4 = vector.broadcast %3 : vector<8x1xf32> to vector<8x32xf32>
    %5 = arith.subf %0, %4 : vector<8x32xf32>
    %cst_3 = arith.constant dense<0xFF800000> : vector<8xf32>
    %6 = vector.multi_reduction <maximumf>, %1, %cst_3 [1] : vector<8x32xf32> to vector<8xf32>
    %7 = vector.shape_cast %6 : vector<8xf32> to vector<8x1xf32>
    %8 = vector.broadcast %7 : vector<8x1xf32> to vector<8x32xf32>
    %9 = arith.subf %1, %8 : vector<8x32xf32>
    %10 = math.exp %5 : vector<8x32xf32>
    %11 = math.exp %9 : vector<8x32xf32>
    %cst_4 = arith.constant dense<0.000000e+00> : vector<8xf32>
    %12 = vector.multi_reduction <add>, %10, %cst_4 [1] : vector<8x32xf32> to vector<8xf32>
    %13 = vector.shape_cast %12 : vector<8xf32> to vector<8x1xf32>
    %cst_5 = arith.constant dense<0.000000e+00> : vector<8xf32>
    %14 = vector.multi_reduction <add>, %11, %cst_5 [1] : vector<8x32xf32> to vector<8xf32>
    %15 = vector.shape_cast %14 : vector<8xf32> to vector<8x1xf32>
    %16 = tpu.reciprocal %13 {approx = true} : vector<8x1xf32> -> vector<8x1xf32>
    %17 = arith.mulf %13, %16 : vector<8x1xf32>
    %cst_6 = arith.constant 2.000000e+00 : f32
    %18 = vector.broadcast %cst_6 : f32 to vector<8x1xf32>
    %19 = arith.subf %18, %17 : vector<8x1xf32>
    %20 = arith.mulf %16, %19 : vector<8x1xf32>
    %21 = tpu.reciprocal %15 {approx = true} : vector<8x1xf32> -> vector<8x1xf32>
    %22 = arith.mulf %15, %21 : vector<8x1xf32>
    %cst_7 = arith.constant 2.000000e+00 : f32
    %23 = vector.broadcast %cst_7 : f32 to vector<8x1xf32>
    %24 = arith.subf %23, %22 : vector<8x1xf32>
    %25 = arith.mulf %21, %24 : vector<8x1xf32>
    %26 = arith.subf %9, %5 : vector<8x32xf32>
    %27 = math.log %15 : vector<8x1xf32>
    %28 = math.log %13 : vector<8x1xf32>
    %29 = arith.subf %27, %28 : vector<8x1xf32>
    %30 = vector.broadcast %29 : vector<8x1xf32> to vector<8x32xf32>
    %31 = arith.subf %26, %30 : vector<8x32xf32>
    %32 = vector.broadcast %25 : vector<8x1xf32> to vector<8x32xf32>
    %33 = arith.mulf %11, %32 : vector<8x32xf32>
    %34 = vector.broadcast %20 : vector<8x1xf32> to vector<8x32xf32>
    %35 = arith.mulf %10, %34 : vector<8x32xf32>
    %36 = arith.subf %33, %35 : vector<8x32xf32>
    %37 = arith.mulf %36, %31 : vector<8x32xf32>
    %cst_8 = arith.constant dense<0.000000e+00> : vector<8xf32>
    %38 = vector.multi_reduction <add>, %37, %cst_8 [1] : vector<8x32xf32> to vector<8xf32>
    %39 = vector.shape_cast %38 : vector<8xf32> to vector<8x1xf32>
    %cst_9 = arith.constant 5.000000e-01 : f32
    %40 = vector.broadcast %cst_9 : f32 to vector<8x1xf32>
    %41 = arith.mulf %40, %39 : vector<8x1xf32>
    %c0_10 = arith.constant 0 : index
    %c0_11 = arith.constant 0 : index
    %42 = vector.load %arg3[%c0_10, %c0_11] : memref<8x1xf32, #tpu.memory_space<vmem>>, vector<8x1xf32>
    tpu.vector_store %arg3[%c0_10, %c0_11], %41 {strides = array<i32>} : memref<8x1xf32, #tpu.memory_space<vmem>>, vector<8x1xf32>,
    return
  }
  func.func @transform_0(%arg0: i32) -> (i32, i32) {
    %c0_i32 = arith.constant 0 : i32
    %c0_i32_0 = arith.constant 0 : i32
    return %arg0, %c0_i32 : i32, i32
  }
  func.func @transform_1(%arg0: i32) -> (i32, i32) {
    %c0_i32 = arith.constant 0 : i32
    %c0_i32_0 = arith.constant 0 : i32
    return %arg0, %c0_i32 : i32, i32
  }
  func.func @transform_2(%arg0: i32) -> (i32, i32) {
    %c0_i32 = arith.constant 0 : i32
    %c0_i32_0 = arith.constant 0 : i32
    return %arg0, %c0_i32 : i32, i32
  }
}

</mosaic_0001>

<bundles_post_ra>
// kernel: kl_divergence_loss.1
= control target key start
LH: loop header
LB: loop body
LE: loop exit
PB: predicated region body
PF: predicated region fallthrough
CT: control target
= control target key end

     0   :  { %7 = vsyncpa [#allocation3], 0  ;;  %s176_s0 = inlined_call_operand.hbm [shape: f32[8,32], index: 0, kind: input, shape index: {}]   ;;  %s177_s1 = inlined_call_operand.hbm [shape: f32[8,32], index: 1, kind: input, shape index: {}]   ;;  %s178_s2 = inlined_call_operand.vmem [shape: f32[8,1], index: 2, kind: output, shape index: {}]  }
   0x1   :  { %8 = vsyncpa [#allocation5], 0  ;;  %s145_s9 = smov [#allocation2]   ;;  %s146_s11 = smov [#allocation4]  }
   0x2   :  { %s15_s10 = sshll.u32 %s145_s9, 4  ;;  %s25_s12 = sshll.u32 %s146_s11, 4  ;;  %s16_s10 = int_to_ptr.vmem [resolvable:$true] %s15_s10  ;;  %s26_s12 = int_to_ptr.vmem [resolvable:$true] %s25_s12 }
   0x3   :  { %s109_s13 = scalar_lea.vmem %s16_s10, 128  ;;  %p114_p1 = scmp.lt.s32.totalorder %s16_s10, %s16_s10 }
   0x4   :  { %p110_p0 = scmp.ne.s32.totalorder %s16_s10, %s109_s13  ;;  %p115_p2 = scmp.lt.s32.totalorder %s109_s13, %s109_s13 }
   0x6   :  { %p116_p3 = por %p115_p2, %p114_p1 }
   0x8   :  { %p117_p4 = pnand %p116_p3, %p110_p0 }
   0xa   :  { %120 = shalt.err (!%p117_p4)
}
   0xb   :  { %18 = dma.hbm_to_vmem [thread:$0]  %s176_s0, 128, %s16_s10, [#allocation3]  }
   0xc   :  { %s129_s16 = scalar_lea.vmem %s26_s12, 128  ;;  %p134_p6 = scmp.lt.s32.totalorder %s26_s12, %s26_s12 }
   0xd   :  { %p130_p5 = scmp.ne.s32.totalorder %s26_s12, %s129_s16  ;;  %p135_p7 = scmp.lt.s32.totalorder %s129_s16, %s129_s16 }
   0xf   :  { %p136_p8 = por %p135_p7, %p134_p6 }
  0x11   :  { %p137_p9 = pnand %p136_p8, %p130_p5 }
  0x13   :  { %140 = shalt.err (!%p137_p9)
}
  0x14   :  { %28 = dma.hbm_to_vmem [thread:$0]  %s177_s1, 128, %s26_s12, [#allocation5]  }
  0x15   :  { %141 = dma.done.wait [#allocation3], 128  }
  0x16   :  { %142 = vsyncadd [#allocation3], 4294967168 }
  0x17   :  { %143 = dma.done.wait [#allocation5], 128  }
  0x18   :  { %144 = vsyncadd [#allocation5], 4294967168  ;;  %vm37_vm0 = vcmask 261120   ;;  %v35_v0 = vld [vmem:[#allocation2] sm:$0xff]  ;;  %v36_v1 = vld [vmem:[#allocation4] sm:$0xff]  ;;  %vm79_vm1 = vcmask 7168  }
  0x19   :  { %v38_v2 = vsel %vm37_vm0, %v35_v0, -inf  ;;  %v42_v3 = vsel %vm37_vm0, %v36_v1, -inf }
  0x1a   :  { %39 = vmax.xlane.f32.xlu0 %v38_v2 }
  0x1e   :  { %43 = vmax.xlane.f32.xlu0 %v42_v3 }
  0xa3   :  { %v40_v4 = vpop.xlane.xlu0 %39 }
  0xa4   :  { %v41_v5 = vsub.f32 %v35_v0, %v40_v4 }
  0xa6   :  { %v46_v6 = vmul.f32 1.442695, %v41_v5 }
  0xa7   :  { %v44_v7 = vpop.xlane.xlu0 %43 }
  0xa8   :  { %89 = vpow2.f32 %v46_v6  ;;  %v45_v8 = vsub.f32 %v36_v1, %v44_v7 }
  0xaa   :  { %v48_v9 = vmul.f32 1.442695, %v45_v8  ;;  %v64_v10 = vsub.f32 %v45_v8, %v41_v5 }
  0xac   :  { %91 = vpow2.f32 %v48_v9 }
  0xb5   :  { %v90_v11 = vpop.eup %89 }
  0xb6   :  { %v50_v12 = vsel %vm37_vm0, %v90_v11, 0.0 }
  0xb7   :  { %51 = vadd.xlane.f32.xlu1 %v50_v12 }
  0xb9   :  { %v92_v13 = vpop.eup %91 }
  0xba   :  { %v53_v14 = vsel %vm37_vm0, %v92_v13, 0.0 }
  0xbb   :  { %54 = vadd.xlane.f32.xlu1 %v53_v14 }
 0x140   :  { %v52_v15 = vpop.xlane.xlu1 %51 }
 0x141   :  { %93 = vrcp.f32 %v52_v15 }
 0x142   :  { %95 = vlog2.f32 %v52_v15 }
 0x144   :  { %v55_v16 = vpop.xlane.xlu1 %54 }
 0x145   :  { %97 = vrcp.f32 %v55_v16 }
 0x146   :  { %99 = vlog2.f32 %v55_v16 }
 0x14e   :  { %v94_v17 = vpop.eup %93 }
 0x14f   :  { %v57_v18 = vmul.f32 %v94_v17, %v52_v15  ;;  %v96_v19 = vpop.eup %95 }
 0x150   :  { %v68_v26 = vmul.f32 0.6931472, %v96_v19 }
 0x151   :  { %v58_v20 = vsub.f32 2.0, %v57_v18 }
 0x152   :  { %v98_v21 = vpop.eup %97 }
 0x153   :  { %v100_v22 = vpop.eup %99  ;;  %v61_v23 = vmul.f32 %v98_v21, %v55_v16  ;;  %v59_v25 = vmul.f32 %v94_v17, %v58_v20 }
 0x154   :  { %v66_v24 = vmul.f32 0.6931472, %v100_v22 }
 0x155   :  { %v62_v27 = vsub.f32 2.0, %v61_v23  ;;  %v72_v31 = vmul.f32 %v90_v11, %v59_v25 }
 0x156   :  { %v69_v29 = vsub.f32 %v66_v24, %v68_v26 }
 0x157   :  { %v63_v28 = vmul.f32 %v98_v21, %v62_v27 }
 0x158   :  { %v70_v32 = vsub.f32 %v64_v10, %v69_v29 }
 0x159   :  { %v71_v30 = vmul.f32 %v92_v13, %v63_v28 }
 0x15b   :  { %v73_v33 = vsub.f32 %v71_v30, %v72_v31 }
 0x15d   :  { %v74_v34 = vmul.f32 %v73_v33, %v70_v32 }
 0x15f   :  { %v75_v35 = vsel %vm37_vm0, %v74_v34, 0.0 }
 0x160   :  { %76 = vadd.xlane.f32.xlu0 %v75_v35 }
 0x1e9   :  { %v77_v36 = vpop.xlane.xlu0 %76 }
 0x1ea   :  { %v78_v37 = vmul.f32 0.5, %v77_v36 }
 0x1ec   :  { %80 = vst.msk [vmem:[%s178_s2] sm:$0xff] %vm79_vm1, %v78_v37 }
 0x1ed   :  { %85 = vsyncpa [#allocation3], 1 }
 0x1ee   :  { %86 = vsyncpa [#allocation5], 1 }

</bundles_post_ra>
